<compile_context>
chip_gen: v6e
topology: v6e:2x2x1
jax: 0.10.0
libtpu: 0.0.40
codegen_flags: <defaults>
</compile_context>

<pallas_src>
import jax
import jax.numpy as jnp
from jax.experimental import pallas as pl
from jax.experimental.pallas import tpu as pltpu


# ---------------------------------------------------------------------------
# Kernel: one (4, TILE_M) tile of boxes/deltas -> (4, TILE_M) tile of preds.
#   row 0 = x1, row 1 = y1, row 2 = x2, row 3 = y2
# ---------------------------------------------------------------------------
def bbox_transform_kernel(mean_ref, std_ref, boxes_ref, deltas_ref, out_ref):
    b = boxes_ref[...]       # (4, TILE_M) f32
    d = deltas_ref[...]      # (4, TILE_M) f32

    x1, y1, x2, y2 = b[0:1], b[1:2], b[2:3], b[3:4]

    widths = x2 - x1
    heights = y2 - y1
    ctr_x = x1 + 0.5 * widths
    ctr_y = y1 + 0.5 * heights

    # SMEM scalar reads (cheap, hoisted once per tile).
    dx = d[0:1] * std_ref[0] + mean_ref[0]
    dy = d[1:2] * std_ref[1] + mean_ref[1]
    dw = d[2:3] * std_ref[2] + mean_ref[2]
    dh = d[3:4] * std_ref[3] + mean_ref[3]

    pred_ctr_x = ctr_x + dx * widths
    pred_ctr_y = ctr_y + dy * heights
    pred_w = jnp.exp(dw) * widths      # EUP
    pred_h = jnp.exp(dh) * heights     # EUP

    out_ref[...] = jnp.concatenate(
        [pred_ctr_x - 0.5 * pred_w,
         pred_ctr_y - 0.5 * pred_h,
         pred_ctr_x + 0.5 * pred_w,
         pred_ctr_y + 0.5 * pred_h],
        axis=0)


# ---------------------------------------------------------------------------
# Wrapper: layout transpose/pad glue + pallas_call with a 1-D grid over boxes.
# ---------------------------------------------------------------------------
def bbox_transform(boxes, deltas, mean, std, tile_m=512):
    B, N, four = boxes.shape
    assert four == 4, boxes.shape
    M = B * N

    # Pick a lane-aligned tile (multiple of 128) and pad M up to a multiple.
    if M <= tile_m:
        tile = max(128, pl.cdiv(M, 128) * 128)
        Mp = tile
    else:
        tile = tile_m
        Mp = pl.cdiv(M, tile) * tile

    boxes_t = boxes.astype(jnp.float32).reshape(M, 4).T     # (4, M)
    deltas_t = deltas.astype(jnp.float32).reshape(M, 4).T   # (4, M)
    pad = Mp - M
    if pad:
        # zero padding is safe: w=h=0 -> exp(0)*0 = 0, no NaN/Inf
        boxes_t = jnp.pad(boxes_t, ((0, 0), (0, pad)))
        deltas_t = jnp.pad(deltas_t, ((0, 0), (0, pad)))

    out_t = pl.pallas_call(
        bbox_transform_kernel,
        out_shape=jax.ShapeDtypeStruct((4, Mp), jnp.float32),
        grid=(Mp // tile,),
        in_specs=[
            pl.BlockSpec(memory_space=pltpu.MemorySpace.SMEM),   # mean (4,)
            pl.BlockSpec(memory_space=pltpu.MemorySpace.SMEM),   # std  (4,)
            pl.BlockSpec((4, tile), lambda i: (0, i)),           # boxes
            pl.BlockSpec((4, tile), lambda i: (0, i)),           # deltas
        ],
        out_specs=pl.BlockSpec((4, tile), lambda i: (0, i)),
        compiler_params=pltpu.CompilerParams(
            dimension_semantics=("parallel",)),
    )(mean.astype(jnp.float32), std.astype(jnp.float32), boxes_t, deltas_t)

    return out_t[:, :M].T.reshape(B, N, 4)


# ---------------------------------------------------------------------------
# Pure-JAX reference (mirrors the PyTorch forward) for a correctness check.
# ---------------------------------------------------------------------------
def bbox_transform_reference(boxes, deltas, mean, std):
    widths = boxes[:, :, 2] - boxes[:, :, 0]
    heights = boxes[:, :, 3] - boxes[:, :, 1]
    ctr_x = boxes[:, :, 0] + 0.5 * widths
    ctr_y = boxes[:, :, 1] + 0.5 * heights
    dx = deltas[:, :, 0] * std[0] + mean[0]
    dy = deltas[:, :, 1] * std[1] + mean[1]
    dw = deltas[:, :, 2] * std[2] + mean[2]
    dh = deltas[:, :, 3] * std[3] + mean[3]
    pred_ctr_x = ctr_x + dx * widths
    pred_ctr_y = ctr_y + dy * heights
    pred_w = jnp.exp(dw) * widths
    pred_h = jnp.exp(dh) * heights
    return jnp.stack(
        [pred_ctr_x - 0.5 * pred_w,
         pred_ctr_y - 0.5 * pred_h,
         pred_ctr_x + 0.5 * pred_w,
         pred_ctr_y + 0.5 * pred_h],
        axis=2)


if __name__ == "__main__":
    B, N = 2, 1024   # M = 2048 -> 4 tiles of 512, exercises the grid

    k1, k2, k3, k4, k5 = jax.random.split(jax.random.PRNGKey(0), 5)
    x1 = jax.random.uniform(k1, (B, N), jnp.float32) * 100.0
    y1 = jax.random.uniform(k2, (B, N), jnp.float32) * 100.0
    w = jax.random.uniform(k3, (B, N), jnp.float32) * 50.0 + 1.0
    h = jax.random.uniform(k4, (B, N), jnp.float32) * 50.0 + 1.0
    boxes = jnp.stack([x1, y1, x1 + w, y1 + h], axis=2)          # (B, N, 4)
    deltas = 0.5 * jax.random.normal(k5, (B, N, 4), jnp.float32)  # (B, N, 4)

    # nn.BatchNorm-free module: default mean/std buffers of BBoxTransform
    mean = jnp.array([0.0, 0.0, 0.0, 0.0], jnp.float32)
    std = jnp.array([0.1, 0.1, 0.2, 0.2], jnp.float32)

    out = jax.block_until_ready(bbox_transform(boxes, deltas, mean, std))
    ref = jax.block_until_ready(bbox_transform_reference(boxes, deltas, mean, std))

    assert out.shape == (B, N, 4), out.shape
    max_err = float(jnp.max(jnp.abs(out - ref)))
    assert max_err < 1e-3, f"mismatch vs reference: {max_err}"
    print("KERNEL_OK")
</pallas_src>

<mosaic_0001>
module attributes {stable_mosaic.version = 11 : i64} {
  func.func @bbox_transform_kernel(%arg0: i32, %arg1: memref<4xf32, #tpu.memory_space<smem>>, %arg2: memref<4xf32, #tpu.memory_space<smem>>, %arg3: memref<4x512xf32, #tpu.memory_space<vmem>>, %arg4: memref<4x512xf32, #tpu.memory_space<vmem>>, %arg5: memref<4x512xf32, #tpu.memory_space<vmem>>) attributes {dimension_semantics = [#tpu.dimension_semantics<parallel>], iteration_bounds = array<i64: 4>, scalar_prefetch = 0 : i64, scratch_operands = 0 : i64, tpu.core_type = #tpu.core_type<tc>, window_params = [{transform_indices = @transform_0, window_bounds = array<i64: 4>}, {transform_indices = @transform_1, window_bounds = array<i64: 4>}, {transform_indices = @transform_2, window_bounds = array<i64: 4, 512>}, {transform_indices = @transform_3, window_bounds = array<i64: 4, 512>}, {transform_indices = @transform_4, window_bounds = array<i64: 4, 512>}]} {
    %c0 = arith.constant 0 : index
    %c0_0 = arith.constant 0 : index
    %0 = vector.load %arg3[%c0, %c0_0] : memref<4x512xf32, #tpu.memory_space<vmem>>, vector<4x512xf32>
    %c0_1 = arith.constant 0 : index
    %c0_2 = arith.constant 0 : index
    %1 = vector.load %arg4[%c0_1, %c0_2] : memref<4x512xf32, #tpu.memory_space<vmem>>, vector<4x512xf32>
    %2 = vector.extract_strided_slice %0 {offsets = [0, 0], sizes = [1, 512], strides = [1, 1]} : vector<4x512xf32> to vector<1x512xf32>
    %3 = vector.extract_strided_slice %0 {offsets = [1, 0], sizes = [1, 512], strides = [1, 1]} : vector<4x512xf32> to vector<1x512xf32>
    %4 = vector.extract_strided_slice %0 {offsets = [2, 0], sizes = [1, 512], strides = [1, 1]} : vector<4x512xf32> to vector<1x512xf32>
    %5 = vector.extract_strided_slice %0 {offsets = [3, 0], sizes = [1, 512], strides = [1, 1]} : vector<4x512xf32> to vector<1x512xf32>
    %6 = arith.subf %4, %2 : vector<1x512xf32>
    %7 = arith.subf %5, %3 : vector<1x512xf32>
    %cst = arith.constant 5.000000e-01 : f32
    %8 = vector.broadcast %cst : f32 to vector<1x512xf32>
    %9 = arith.mulf %8, %6 : vector<1x512xf32>
    %10 = arith.addf %2, %9 : vector<1x512xf32>
    %cst_3 = arith.constant 5.000000e-01 : f32
    %11 = vector.broadcast %cst_3 : f32 to vector<1x512xf32>
    %12 = arith.mulf %11, %7 : vector<1x512xf32>
    %13 = arith.addf %3, %12 : vector<1x512xf32>
    %14 = vector.extract_strided_slice %1 {offsets = [0, 0], sizes = [1, 512], strides = [1, 1]} : vector<4x512xf32> to vector<1x512xf32>
    %c0_4 = arith.constant 0 : index
    %15 = memref.load %arg2[%c0_4] : memref<4xf32, #tpu.memory_space<smem>>
    %16 = vector.broadcast %15 : f32 to vector<1x512xf32>
    %17 = arith.mulf %14, %16 : vector<1x512xf32>
    %c0_5 = arith.constant 0 : index
    %18 = memref.load %arg1[%c0_5] : memref<4xf32, #tpu.memory_space<smem>>
    %19 = vector.broadcast %18 : f32 to vector<1x512xf32>
    %20 = arith.addf %17, %19 : vector<1x512xf32>
    %21 = vector.extract_strided_slice %1 {offsets = [1, 0], sizes = [1, 512], strides = [1, 1]} : vector<4x512xf32> to vector<1x512xf32>
    %c1 = arith.constant 1 : index
    %22 = memref.load %arg2[%c1] : memref<4xf32, #tpu.memory_space<smem>>
    %23 = vector.broadcast %22 : f32 to vector<1x512xf32>
    %24 = arith.mulf %21, %23 : vector<1x512xf32>
    %c1_6 = arith.constant 1 : index
    %25 = memref.load %arg1[%c1_6] : memref<4xf32, #tpu.memory_space<smem>>
    %26 = vector.broadcast %25 : f32 to vector<1x512xf32>
    %27 = arith.addf %24, %26 : vector<1x512xf32>
    %28 = vector.extract_strided_slice %1 {offsets = [2, 0], sizes = [1, 512], strides = [1, 1]} : vector<4x512xf32> to vector<1x512xf32>
    %c2 = arith.constant 2 : index
    %29 = memref.load %arg2[%c2] : memref<4xf32, #tpu.memory_space<smem>>
    %30 = vector.broadcast %29 : f32 to vector<1x512xf32>
    %31 = arith.mulf %28, %30 : vector<1x512xf32>
    %c2_7 = arith.constant 2 : index
    %32 = memref.load %arg1[%c2_7] : memref<4xf32, #tpu.memory_space<smem>>
    %33 = vector.broadcast %32 : f32 to vector<1x512xf32>
    %34 = arith.addf %31, %33 : vector<1x512xf32>
    %35 = vector.extract_strided_slice %1 {offsets = [3, 0], sizes = [1, 512], strides = [1, 1]} : vector<4x512xf32> to vector<1x512xf32>
    %c3 = arith.constant 3 : index
    %36 = memref.load %arg2[%c3] : memref<4xf32, #tpu.memory_space<smem>>
    %37 = vector.broadcast %36 : f32 to vector<1x512xf32>
    %38 = arith.mulf %35, %37 : vector<1x512xf32>
    %c3_8 = arith.constant 3 : index
    %39 = memref.load %arg1[%c3_8] : memref<4xf32, #tpu.memory_space<smem>>
    %40 = vector.broadcast %39 : f32 to vector<1x512xf32>
    %41 = arith.addf %38, %40 : vector<1x512xf32>
    %42 = arith.mulf %20, %6 : vector<1x512xf32>
    %43 = arith.addf %10, %42 : vector<1x512xf32>
    %44 = arith.mulf %27, %7 : vector<1x512xf32>
    %45 = arith.addf %13, %44 : vector<1x512xf32>
    %46 = math.exp %34 : vector<1x512xf32>
    %47 = arith.mulf %46, %6 : vector<1x512xf32>
    %48 = math.exp %41 : vector<1x512xf32>
    %49 = arith.mulf %48, %7 : vector<1x512xf32>
    %cst_9 = arith.constant 5.000000e-01 : f32
    %50 = vector.broadcast %cst_9 : f32 to vector<1x512xf32>
    %51 = arith.mulf %50, %47 : vector<1x512xf32>
    %52 = arith.subf %43, %51 : vector<1x512xf32>
    %cst_10 = arith.constant 5.000000e-01 : f32
    %53 = vector.broadcast %cst_10 : f32 to vector<1x512xf32>
    %54 = arith.mulf %53, %49 : vector<1x512xf32>
    %55 = arith.subf %45, %54 : vector<1x512xf32>
    %cst_11 = arith.constant 5.000000e-01 : f32
    %56 = vector.broadcast %cst_11 : f32 to vector<1x512xf32>
    %57 = arith.mulf %56, %47 : vector<1x512xf32>
    %58 = arith.addf %43, %57 : vector<1x512xf32>
    %cst_12 = arith.constant 5.000000e-01 : f32
    %59 = vector.broadcast %cst_12 : f32 to vector<1x512xf32>
    %60 = arith.mulf %59, %49 : vector<1x512xf32>
    %61 = arith.addf %45, %60 : vector<1x512xf32>
    %62 = tpu.concatenate %52, %55, %58, %61 in 0 : vector<1x512xf32>, vector<1x512xf32>, vector<1x512xf32>, vector<1x512xf32> -> vector<4x512xf32>
    %c0_13 = arith.constant 0 : index
    %c0_14 = arith.constant 0 : index
    %63 = vector.load %arg5[%c0_13, %c0_14] : memref<4x512xf32, #tpu.memory_space<vmem>>, vector<4x512xf32>
    tpu.vector_store %arg5[%c0_13, %c0_14], %62 {strides = array<i32>} : memref<4x512xf32, #tpu.memory_space<vmem>>, vector<4x512xf32>,
    return
  }
  func.func @transform_0(%arg0: i32) -> i32 {
    %c0_i32 = arith.constant 0 : i32
    %c0_i32_0 = arith.constant 0 : i32
    return %c0_i32 : i32
  }
  func.func @transform_1(%arg0: i32) -> i32 {
    %c0_i32 = arith.constant 0 : i32
    %c0_i32_0 = arith.constant 0 : i32
    return %c0_i32 : i32
  }
  func.func @transform_2(%arg0: i32) -> (i32, i32) {
    %c0_i32 = arith.constant 0 : i32
    %c0_i32_0 = arith.constant 0 : i32
    return %c0_i32, %arg0 : i32, i32
  }
  func.func @transform_3(%arg0: i32) -> (i32, i32) {
    %c0_i32 = arith.constant 0 : i32
    %c0_i32_0 = arith.constant 0 : i32
    return %c0_i32, %arg0 : i32, i32
  }
  func.func @transform_4(%arg0: i32) -> (i32, i32) {
    %c0_i32 = arith.constant 0 : i32
    %c0_i32_0 = arith.constant 0 : i32
    return %c0_i32, %arg0 : i32, i32
  }
}

</mosaic_0001>

<bundles_post_ra>
// kernel: tpu_custom_call.1
= control target key start
LH: loop header
LB: loop body
LE: loop exit
PB: predicated region body
PF: predicated region fallthrough
CT: control target
= control target key end

     0   :  { %s1191_s0 = inlined_call_operand.hbm [shape: f32[4], index: 0, kind: input, shape index: {}]   ;;  %s1192_s1 = inlined_call_operand.vmem [shape: f32[4], index: 1, kind: input, shape index: {}]   ;;  %s1193_s2 = inlined_call_operand.hbm [shape: f32[4,2048], index: 2, kind: input, shape index: {}]   ;;  %s1194_s3 = inlined_call_operand.hbm [shape: f32[4,2048], index: 3, kind: input, shape index: {}]   ;;  %s1195_s4 = inlined_call_operand.hbm [shape: f32[4,2048], index: 4, kind: output, shape index: {}]  }
   0x1   :  { %1201 = sst [smem:[#allocation17_spill]] %s1191_s0 }
   0x2   :  { %9 = vsyncpa [#allocation5], 0 }
   0x3   :  { %10 = vsyncpa [#allocation6], 0 }
   0x4   :  { %11 = vsyncpa [#allocation3], 0 }
   0x5   :  { %13 = vsyncpa [#allocation3 + $0x1], 0 }
   0x6   :  { %14 = vsyncpa [#allocation10], 0 }
   0x7   :  { %16 = vsyncpa [#allocation10 + $0x1], 0 }
   0x8   :  { %17 = vsyncpa [#allocation4], 0 }
   0x9   :  { %19 = vsyncpa [#allocation4 + $0x1], 0  ;;  %s940_s15 = smov 0   ;;  %s942_s16 = smov 0  }
   0xa   :  { %s944_s17 = smov 0   ;;  %s946_s18 = smov 0  }
   0xb LB: > { %s961_s19 = sadd.s32 4294967295, %s908_s18   ;;  %s637_s20 = sadd.s32 4294967294, %s908_s18   ;;  %s908_s18 = sphi %s946_s18, %s1222_s18   ;;  %s904_s17 = sphi %s944_s17, %s1221_s17   ;;  %s900_s16 = sphi %s942_s16, %s1220_s16   ;;  %s896_s15 = sphi %s940_s15, %s1219_s15  }
   0xc   : > { %p87_p0 = scmp.ne.s32.totalorder %s900_s16, %s896_s15  ;;  %p1196_p1 = scmp.eq.s32.totalorder %s961_s19, 0 }
   0xd   : > { %p137_p2 = scmp.eq.s32.totalorder %s961_s19, 3  ;;  %p143_p3 = scmp.eq.s32.totalorder %s637_s20, 3 }
   0xe   : > { %p970_p4 = por %p1196_p1, %p87_p0  ;;  %p638_p5 = scmp.ge.s32.totalorder %s908_s18, 1 }
   0xf   : > { %p975_p6 = por %p143_p3, %p87_p0  ;;  %p150_p7 = scmp.lt.s32.totalorder %s908_s18, 5 }
  0x10   : > { %s1202_s21 = scalar_select %p970_p4, 1, 0 }
  0x11   : > { %s1203_s22 = scalar_select %p975_p6, 1, 0 }
  0x12   : > { %p980_p8 = pnand %p638_p5, %p150_p7  ;;  %s172_s26 = sshll.u32 %s1192_s1, 4  ;;  %s173_s26 = int_to_ptr.vmem [resolvable:$true] %s172_s26 }
  0x13   : > { %s990_s27 = sadd.s32 1, %s908_s18   ;;  %s74_s30 = sadd.s32 1, %s904_s17 }
  0x14   : > { %s1204_s23 = scalar_select %p980_p8, 1, 0 }
  0x15   : > { %p684_p9 = pneg %p980_p8  ;;  %s71_s29 = ssub.s32 %s908_s18, %s990_s27 }
  0x16   : > { %p1001_p11 = scmp.eq.s32.totalorder %s71_s29, 0  ;;  %s910_s6 = smov [#allocation2]  }
  0x17   : > { %p994_p10 = pnand %p684_p9, %p1196_p1  ;;  %s1207_s0 = sld [smem:[#allocation17_spill]] }
  0x18   : > { %s761_s9 = scalar_lea.vmem %s173_s26, 16  ;;  %p769_p5 = scmp.lt.s32.totalorder %s173_s26, %s173_s26 }
  0x19   : > { %p762_p12 = scmp.ne.s32.totalorder %s173_s26, %s761_s9  ;;  %p763_p13 = pneg %p994_p10 }
  0x1a   : > { %p770_p7 = scmp.lt.s32.totalorder %s761_s9, %s761_s9 }
  0x1b   : > { %p764_p0 = pnand %p763_p13, %p762_p12 }
  0x1c   : > { %p771_p9 = por %p770_p7, %p769_p5 }
  0x1d   : > { %687 = dma.hbm_to_smem (!%p994_p10), %s1207_s0, 16, %s910_s6, [#allocation5]  }
  0x1e   : > { %p765_p3 = pneg %p764_p0 }
  0x20   : > { %p772_p1 = pnand %p771_p9, %p765_p3 }
  0x22   : > { %775 = shalt.err (!%p772_p1)
}
  0x23   : > { %s911_s10 = smov [#allocation7]   ;;  %p81_p12 = scmp.ne.s32.totalorder %s904_s17, %s900_s16 }
  0x24   : > { %690 = dma.vmem_to_smem (!%p994_p10), %s173_s26, 16, %s911_s10, [#allocation6]  }
  0x25   : > { %s1017_s11 = scalar_select %p1001_p11, %s904_s17, %s74_s30  }
  0x26   : > { %p82_p13 = scmp.eq.s32.totalorder %s908_s18, 0  ;;  %p704_p0 = scmp.lt.s32.totalorder %s908_s18, 4 }
  0x27   : > { %s1024_s12 = sand.u32 1, %s904_s17   ;;  %p1028_p3 = por %p137_p2, %p81_p12 }
  0x28   : > { %p83_p1 = por %p82_p13, %p81_p12  ;;  %s1197_s14 = sshll.u32 %s1024_s12, 4 }
  0x29   : > { %s1208_s13 = scalar_select %p1028_p3, 1, 0 }
  0x2a   : > { %s667_s20 = sshll.u32 %s908_s18, 8  ;;  %s187_s28 = scalar_lea.vmem [#allocation8], %s1197_s14 }
  0x2b   : > { %s1037_s26 = scalar_lea.hbm %s1193_s2, %s667_s20  ;;  %s195_s29 = sshll.u32 %s187_s28, 4  ;;  %s1041_s29 = int_to_ptr.vmem [resolvable:$true] %s195_s29 }
  0x2c   : > { %p1043_p10 = pnand %p704_p0, %p83_p1  ;;  %s1050_s7 = scalar_lea.hbm %s1194_s3, %s667_s20 }
  0x2d   : > { %s184_s8 = scalar_lea.sflag [#allocation3], %s1024_s12  ;;  %s776_s9 = scalar_lea.hbm %s1037_s26, 256 }
  0x2e   : > { %p777_p2 = scmp.ne.s32.totalorder %s1037_s26, %s776_s9  ;;  %p778_p11 = pneg %p1043_p10 }
  0x2f   : > { %s781_s25 = scalar_lea.hbm %s1193_s2, 1024  ;;  %p782_p9 = scmp.lt.s32.totalorder %s1037_s26, %s1193_s2 }
  0x30   : > { %p779_p5 = pnand %p778_p11, %p777_p2  ;;  %p783_p12 = scmp.lt.s32.totalorder %s781_s25, %s776_s9 }
  0x32   : > { %p780_p7 = pneg %p779_p5  ;;  %p784_p13 = por %p783_p12, %p782_p9 }
  0x34   : > { %p785_p0 = pnand %p784_p13, %p780_p7 }
  0x36   : > { %788 = shalt.err (!%p785_p0)
}
  0x37   : > { %s789_s20 = scalar_lea.vmem %s1041_s29, 256  ;;  %s912_s5 = smov [#allocation8]  }
  0x38   : > { %p790_p1 = scmp.ne.s32.totalorder %s1041_s29, %s789_s20  ;;  %s794_s6 = sshll.u32 %s912_s5, 4  ;;  %s795_s6 = int_to_ptr.vmem [resolvable:$false] %s794_s6 }
  0x39   : > { %s796_s10 = scalar_lea.vmem %s795_s6, 512  ;;  %p797_p6 = scmp.lt.s32.totalorder %s1041_s29, %s795_s6 }
  0x3a   : > { %p792_p2 = pnand %p790_p1, %p778_p11  ;;  %p798_p3 = scmp.lt.s32.totalorder %s796_s10, %s789_s20 }
  0x3c   : > { %p793_p5 = pneg %p792_p2  ;;  %p799_p4 = por %p798_p3, %p797_p6 }
  0x3e   : > { %p800_p9 = pnand %p799_p4, %p793_p5 }
  0x40   : > { %803 = shalt.err (!%p800_p9)
}
  0x41   : > { %694 = dma.hbm_to_vmem [thread:$0]  (!%p1043_p10), %s1037_s26, 256, %s1041_s29, %s184_s8  }
  0x42   : > { %s1210_s14 = sshll.u32 %s1024_s12, 4  ;;  %s203_s25 = scalar_lea.sflag [#allocation10], %s1024_s12 }
  0x43   : > { %s206_s9 = scalar_lea.vmem [#allocation9], %s1210_s14  ;;  %s804_s28 = scalar_lea.hbm %s1050_s7, 256 }
  0x44   : > { %s214_s24 = sshll.u32 %s206_s9, 4  ;;  %p805_p6 = scmp.ne.s32.totalorder %s1050_s7, %s804_s28  ;;  %s215_s24 = int_to_ptr.vmem [resolvable:$true] %s214_s24 }
  0x45   : > { %s809_s6 = scalar_lea.hbm %s1194_s3, 1024  ;;  %p810_p7 = scmp.lt.s32.totalorder %s1050_s7, %s1194_s3 }
  0x46   : > { %p807_p4 = pnand %p805_p6, %p778_p11  ;;  %p811_p12 = scmp.lt.s32.totalorder %s809_s6, %s804_s28 }
  0x48   : > { %p808_p3 = pneg %p807_p4  ;;  %p812_p13 = por %p811_p12, %p810_p7 }
  0x4a   : > { %p813_p0 = pnand %p812_p13, %p808_p3 }
  0x4c   : > { %816 = shalt.err (!%p813_p0)
}
  0x4d   : > { %s817_s26 = scalar_lea.vmem %s215_s24, 256  ;;  %s913_s12 = smov [#allocation9]  }
  0x4e   : > { %p818_p1 = scmp.ne.s32.totalorder %s215_s24, %s817_s26  ;;  %s822_s29 = sshll.u32 %s913_s12, 4  ;;  %s823_s29 = int_to_ptr.vmem [resolvable:$false] %s822_s29 }
  0x4f   : > { %s824_s8 = scalar_lea.vmem %s823_s29, 512  ;;  %p825_p9 = scmp.lt.s32.totalorder %s215_s24, %s823_s29 }
  0x50   : > { %p820_p2 = pnand %p818_p1, %p778_p11  ;;  %p826_p6 = scmp.lt.s32.totalorder %s824_s8, %s817_s26 }
  0x52   : > { %p821_p5 = pneg %p820_p2  ;;  %p827_p4 = por %p826_p6, %p825_p9 }
  0x54   : > { %p828_p8 = pnand %p827_p4, %p821_p5 }
  0x56   : > { %831 = shalt.err (!%p828_p8)
}
  0x57   : > { %697 = dma.hbm_to_vmem [thread:$0]  (!%p1043_p10), %s1050_s7, 256, %s215_s24, %s203_s25  }
  0x58   : > { %p1211_p3 = scmp.ne.s32.totalorder %s1204_s23, 0 }
  0x59   : > { %p1212_p7 = scmp.eq.s32.totalorder (!%p1211_p3), %s961_s19, 0 }
  0x5a   : > { %223 = sbr.rel (%p1211_p3) target bundleno = 170 (0xaa), region = 36 }
  0x5f   : > { %875 = dma.done.wait (%p1212_p7), [#allocation5], 16   ;;  %p1213_p11 = pmov %p1212_p7 }
  0x60   : > { %p1214_p12 = pmov %p1212_p7 }
  0x61   : > { %877 = vsyncadd (%p1213_p11), [#allocation5], 4294967280 }
  0x62   : > { %879 = dma.done.wait (%p1214_p12), [#allocation6], 16   ;;  %p1215_p13 = pmov %p1212_p7 }
  0x63   : > { %s1109_s0 = sand.u32 1, %s900_s16   ;;  %p1216_p8 = scmp.ne.s32.totalorder %s1202_s21, 0 }
  0x64   : > { %881 = vsyncadd (%p1215_p13), [#allocation6], 4294967280  ;;  %s1112_s23 = sshll.u32 %s1109_s0, 4  ;;  %s234_s30 = scalar_lea.sflag [#allocation3], %s1109_s0 }
  0x65   : > { %s237_s7 = scalar_lea.vmem [#allocation8], %s1112_s23 }
  0x66   : > { %883 = dma.done.wait (%p1216_p8), %s234_s30, 256  }
  0x67   : > { %885 = vsyncadd (%p1216_p8), %s234_s30, 4294967040  ;;  %s243_s14 = scalar_lea.sflag [#allocation10], %s1109_s0  ;;  %s246_s9 = scalar_lea.vmem [#allocation9], %s1112_s23 }
  0x68   : > { %887 = dma.done.wait (%p1216_p8), %s243_s14, 256  }
  0x69   : > { %889 = vsyncadd (%p1216_p8), %s243_s14, 4294967040 }
  0x6a   : > { %251 = sfence }
  0x6b   : > { %s658_s24 = sld [smem:[#allocation7 + $0x2]]  ;;  %v282_v0 = vld [vmem:[%s246_s9] sm:$0xff]  ;;  %v283_v1 = vld [vmem:[%s246_s9 + $0x8] sm:$0xff]  ;;  %v394_v38 = vlaneseq  ;;  %vm480_vm0 = vcmask 1040384   ;;  %vm485_vm1 = vcmask 1041408   ;;  %vm490_vm2 = vcmask 1042432  }
  0x6c   : > { %s659_s25 = sld [smem:[#allocation2 + $0x2]]  ;;  %v280_v5 = vld [vmem:[%s237_s7] sm:$0xff]  ;;  %v281_v16 = vld [vmem:[%s237_s7 + $0x8] sm:$0xff]  ;;  %s276_s26 = scalar_lea.vmem [#allocation11], %s1112_s23 }
  0x6d   : > { %s660_s28 = sld [smem:[#allocation7 + $0x3]]  ;;  %v286_v13 = vrot.slane %v280_v5, 6  ;;  %v287_v20 = vrot.slane %v281_v16, 6  ;;  %v395_v49 = vshrl.u32 %v394_v38, 7  ;;  %s520_s12 = sshll.u32 %s276_s26, 4  ;;  %s1151_s12 = int_to_ptr.vmem [resolvable:$true] %s520_s12 }
  0x6e   : > { %s661_s20 = sld [smem:[#allocation2 + $0x3]]  ;;  %s669_s29 = sshll.u32 %s961_s19, 8 }
  0x6f   : > { %s1126_s5 = sld [smem:[#allocation7]]  ;;  %v290_v22 = vsub.f32 %v280_v5, %v286_v13  ;;  %v291_v25 = vsub.f32 %v281_v16, %v287_v20  ;;  %v396_v63 = vsub.s32 0, %v395_v49  ;;  %s518_s30 = scalar_lea.hbm %s1195_s4, %s669_s29 }
  0x70   : > { %s1128_s21 = sld [smem:[#allocation7 + $0x1]]  ;;  %s506_s7 = scalar_lea.sflag [#allocation4], %s1109_s0 }
  0x71   : > { %v321_v2 = vstv %s658_s24  ;;  %s1130_s6 = sld [smem:[#allocation2]]  ;;  %v292_v26 = vmul.f32 0.5, %v290_v22  ;;  %v338_v28 = vrot.slane %v290_v22, 6  ;;  %v293_v32 = vmul.f32 0.5, %v291_v25  ;;  %s832_s19 = scalar_lea.vmem %s1151_s12, 256 }
  0x72   : > { %v322_v3 = vmul.f32 %v321_v2, %v282_v0  ;;  %v325_v4 = vstv %s659_s25  ;;  %v323_v7 = vmul.f32 %v321_v2, %v283_v1  ;;  %s1132_s10 = sld [smem:[#allocation2 + $0x1]]  ;;  %v340_v34 = vrot.slane %v291_v25, 6  ;;  %p833_p10 = scmp.ne.s32.totalorder %s1151_s12, %s832_s19 }
  0x73   : > { %v329_v6 = vstv %s660_s28  ;;  %v654_v35 = vrot.slane %v292_v26, 10  ;;  %v339_v37 = vrot.slane %v338_v28, 4  ;;  %v655_v42 = vrot.slane %v293_v32, 10  ;;  %p1217_p0 = scmp.ne.s32.totalorder %s1208_s13, 0  ;;  %s914_s14 = smov [#allocation11]  }
  0x74   : > { %v326_v8 = vadd.f32 %v325_v4, %v322_v3  ;;  %v330_v9 = vmul.f32 %v329_v6, %v282_v0  ;;  %v333_v10 = vstv %s661_s20  ;;  %v327_v11 = vadd.f32 %v325_v4, %v323_v7  ;;  %s836_s9 = sshll.u32 %s914_s14, 4  ;;  %s837_s9 = int_to_ptr.vmem [resolvable:$false] %s836_s9 }
  0x75   : > { %v331_v12 = vmul.f32 %v329_v6, %v283_v1  ;;  %v305_v23 = vstv %s1126_s5  ;;  %v341_v44 = vrot.slane %v340_v34, 4  ;;  %v302_v45 = vadd.f32 %v654_v35, %v280_v5  ;;  %p834_p1 = pnand %p833_p10, %p1217_p0  ;;  %s838_s24 = scalar_lea.vmem %s837_s9, 512 }
  0x76   : > { %v334_v14 = vadd.f32 %v333_v10, %v330_v9  ;;  %v352_v15 = vmul.f32 1.442695, %v326_v8  ;;  %v354_v19 = vmul.f32 1.442695, %v327_v11  ;;  %v313_v24 = vstv %s1128_s21  ;;  %p839_p5 = scmp.lt.s32.totalorder %s1151_s12, %s837_s9  ;;  %p840_p9 = scmp.lt.s32.totalorder %s838_s24, %s832_s19 }
  0x77   : > { %v335_v17 = vadd.f32 %v333_v10, %v331_v12  ;;  %v306_v27 = vmul.f32 %v305_v23, %v282_v0  ;;  %v309_v29 = vstv %s1130_s6  ;;  %v314_v30 = vmul.f32 %v313_v24, %v282_v0  ;;  %p835_p2 = pneg %p834_p1 }
  0x78   : > { %742 = vpow2.f32 %v352_v15  ;;  %v358_v18 = vmul.f32 1.442695, %v334_v14  ;;  %v317_v31 = vstv %s1132_s10  ;;  %v307_v33 = vmul.f32 %v305_v23, %v283_v1  ;;  %p841_p6 = por %p840_p9, %p839_p5 }
  0x79   : > { %v360_v21 = vmul.f32 1.442695, %v335_v17  ;;  %v310_v36 = vadd.f32 %v309_v29, %v306_v27  ;;  %v315_v39 = vmul.f32 %v313_v24, %v283_v1  ;;  %v318_v40 = vadd.f32 %v317_v31, %v314_v30 }
  0x7a   : > { %744 = vpow2.f32 %v358_v18  ;;  %v311_v43 = vadd.f32 %v309_v29, %v307_v33  ;;  %v303_v56 = vadd.f32 %v655_v42, %v281_v16  ;;  %v400_v0 = vsub.s32 4, %v395_v49  ;;  %p842_p4 = pnand %p841_p6, %p835_p2 }
  0x7b   : > { %746 = vpow2.f32 %v354_v19  ;;  %v344_v46 = vmul.f32 %v339_v37, %v310_v36  ;;  %v319_v50 = vadd.f32 %v317_v31, %v315_v39  ;;  %v348_v52 = vmul.f32 %v339_v37, %v318_v40 }
  0x7c   : > { %748 = vpow2.f32 %v360_v21  ;;  %v345_v57 = vmul.f32 %v341_v44, %v311_v43  ;;  %v418_v7 = vsub.s32 1, %v395_v49  ;;  %v422_v8 = vsub.s32 5, %v395_v49 }
  0x7d   : > { %v346_v59 = vadd.f32 %v344_v46, %v302_v45  ;;  %v349_v1 = vmul.f32 %v341_v44, %v319_v50  ;;  %v350_v3 = vadd.f32 %v348_v52, %v302_v45 }
  0x7e   : > { %v347_v9 = vadd.f32 %v345_v57, %v303_v56 }
  0x7f   : > { %v351_v15 = vadd.f32 %v349_v1, %v303_v56 }
  0x85   : > { %v743_v41 = vpop.eup %742 }
  0x86   : > { %v356_v47 = vmul.f32 %v743_v41, %v290_v22 }
  0x87   : > { %v745_v48 = vpop.eup %744 }
  0x88   : > { %v747_v51 = vpop.eup %746  ;;  %v362_v53 = vmul.f32 %v745_v48, %v290_v22  ;;  %v364_v54 = vmul.f32 0.5, %v356_v47 }
  0x89   : > { %v749_v55 = vpop.eup %748  ;;  %v357_v58 = vmul.f32 %v747_v51, %v291_v25 }
  0x8a   : > { %v368_v60 = vrot.slane %v364_v54, 6  ;;  %v376_v61 = vmul.f32 0.5, %v362_v53  ;;  %v363_v62 = vmul.f32 %v749_v55, %v291_v25 }
  0x8b   : > { %v365_v2 = vmul.f32 0.5, %v357_v58 }
  0x8c   : > { %v369_v4 = vrot.slane %v368_v60, 4  ;;  %v380_v5 = vrot.slane %v376_v61, 6  ;;  %v377_v6 = vmul.f32 0.5, %v363_v62 }
  0x8d   : > { %v370_v10 = vrot.slane %v365_v2, 6 }
  0x8e   : > { %v374_v11 = vsub.f32 %v346_v59, %v369_v4  ;;  %v381_v12 = vrot.slane %v380_v5, 4  ;;  %v388_v13 = vadd.f32 %v369_v4, %v346_v59  ;;  %v382_v14 = vrot.slane %v377_v6, 6 }
  0x8f   : > { %v371_v16 = vrot.slane %v370_v10, 4 }
  0x90   : > { %v386_v17 = vsub.f32 %v350_v3, %v381_v12  ;;  %v390_v18 = vadd.f32 %v381_v12, %v350_v3  ;;  %v397_v19 = vrot.slane %v374_v11, %v396_v63  ;;  %v401_v20 = vrot.slane %v374_v11, %v400_v0 }
  0x91   : > { %v441_v21 = vrot.slane %v388_v13, %v396_v63  ;;  %v445_v22 = vrot.slane %v388_v13, %v400_v0  ;;  %v375_v23 = vsub.f32 %v347_v9, %v371_v16  ;;  %v383_v24 = vrot.slane %v382_v14, 4 }
  0x92   : > { %v419_v25 = vrot.slane %v386_v17, %v418_v7  ;;  %v423_v26 = vrot.slane %v386_v17, %v422_v8  ;;  %v463_v27 = vrot.slane %v390_v18, %v418_v7  ;;  %v467_v28 = vrot.slane %v390_v18, %v422_v8 }
  0x93   : > { %v387_v29 = vsub.f32 %v351_v15, %v383_v24  ;;  %v389_v30 = vadd.f32 %v371_v16, %v347_v9  ;;  %v391_v31 = vadd.f32 %v383_v24, %v351_v15  ;;  %v405_v32 = vrot.slane %v375_v23, %v396_v63 }
  0x94   : > { %v481_v33 = vsel %vm480_vm0, %v397_v19, %v419_v25  ;;  %v482_v34 = vsel %vm480_vm0, %v401_v20, %v423_v26  ;;  %v409_v35 = vrot.slane %v375_v23, %v400_v0 }
  0x95   : > { %v486_v36 = vsel %vm485_vm1, %v481_v33, %v441_v21  ;;  %v487_v37 = vsel %vm485_vm1, %v482_v34, %v445_v22  ;;  %v427_v38 = vrot.slane %v387_v29, %v418_v7  ;;  %v431_v39 = vrot.slane %v387_v29, %v422_v8 }
  0x96   : > { %v491_v40 = vsel %vm490_vm2, %v486_v36, %v463_v27  ;;  %v492_v41 = vsel %vm490_vm2, %v487_v37, %v467_v28  ;;  %v449_v42 = vrot.slane %v389_v30, %v396_v63  ;;  %v453_v43 = vrot.slane %v389_v30, %v400_v0 }
  0x97   : > { %v499_v44 = vcombine.low %v491_v40, %v492_v41  ;;  %v471_v45 = vrot.slane %v391_v31, %v418_v7  ;;  %v475_v46 = vrot.slane %v391_v31, %v422_v8  ;;  %v483_v47 = vsel %vm480_vm0, %v405_v32, %v427_v38 }
  0x98   : > { %v484_v48 = vsel %vm480_vm0, %v409_v35, %v431_v39  ;;  %v488_v49 = vsel %vm485_vm1, %v483_v47, %v449_v42 }
  0x99   : > { %503 = vst [vmem:[%s276_s26] sm:$0xff] %v499_v44  ;;  %v489_v50 = vsel %vm485_vm1, %v484_v48, %v453_v43  ;;  %v493_v51 = vsel %vm490_vm2, %v488_v49, %v471_v45 }
  0x9a   : > { %v494_v52 = vsel %vm490_vm2, %v489_v50, %v475_v46 }
  0x9b   : > { %v500_v53 = vcombine.low %v493_v51, %v494_v52 }
  0x9d   : > { %504 = vst [vmem:[%s276_s26 + $0x8] sm:$0xff] %v500_v53 }
  0x9e   : > { %845 = shalt.err (!%p842_p4)
}
  0x9f   : > { %s846_s25 = scalar_lea.hbm %s518_s30, 256  ;;  %s850_s20 = scalar_lea.hbm %s1195_s4, 1024 }
  0xa0   : > { %p847_p3 = scmp.ne.s32.totalorder %s518_s30, %s846_s25  ;;  %p851_p12 = scmp.lt.s32.totalorder %s518_s30, %s1195_s4 }
  0xa1   : > { %p852_p13 = scmp.lt.s32.totalorder %s850_s20, %s846_s25 }
  0xa2   : > { %p848_p7 = pnand %p847_p3, %p1217_p0 }
  0xa3   : > { %p853_p8 = por %p852_p13, %p851_p12 }
  0xa4   : > { %p849_p11 = pneg %p848_p7 }
  0xa6   : > { %p854_p10 = pnand %p853_p8, %p849_p11 }
  0xa8   : > { %857 = shalt.err (!%p854_p10)
}
  0xa9   : > { %682 = dma.vmem_to_hbm [thread:$0]  (%p1217_p0), %s1151_s12, 256, %s518_s30, %s506_s7  }
  0xaa PF: > { %p707_p1 = scmp.ge.s32.totalorder %s908_s18, 2  ;;  %s532_s6 = sand.u32 1, %s896_s15  }
  0xab   : > { %p1218_p2 = scmp.ne.s32.totalorder %s1203_s22, 0  ;;  %s533_s10 = scalar_lea.sflag [#allocation4], %s532_s6 }
  0xad   : > { %p699_p5 = pnand %p707_p1, %p1218_p2 }
  0xaf   : > { %p700_p9 = pneg %p699_p5 }
  0xb1   : > { %891 = dma.done.wait (%p700_p9), %s533_s10, 256  }
  0xb2   : > { %893 = vsyncadd (%p700_p9), %s533_s10, 4294967040  ;;  %p22_p6 = scmp.ge.s32.totalorder %s990_s27, 6   ;;  %s1219_s15 = smov %s900_s16 }
  0xb3   : > { %s1220_s16 = smov %s904_s17  ;;  %s1221_s17 = smov %s1017_s11 }
  0xb4   : > { %s1222_s18 = smov %s990_s27  ;;  %24 = sbr.rel (!%p22_p6) target bundleno = 11 (0xb), region = 104 }
  0xb9   :  { %538 = vsyncpa [#allocation3], 1 }
  0xba   :  { %540 = vsyncpa [#allocation3 + $0x1], 1 }
  0xbb   :  { %541 = vsyncpa [#allocation10], 1 }
  0xbc   :  { %543 = vsyncpa [#allocation10 + $0x1], 1 }
  0xbd   :  { %544 = vsyncpa [#allocation4], 1 }
  0xbe   :  { %546 = vsyncpa [#allocation4 + $0x1], 1 }
  0xbf   :  { %547 = vsyncpa [#allocation5], 1 }
  0xc0   :  { %549 = vsyncpa [#allocation5 + $0x1], 1 }
  0xc1   :  { %550 = vsyncpa [#allocation6], 1 }
  0xc2   :  { %552 = vsyncpa [#allocation6 + $0x1], 1 }

</bundles_post_ra>
